<compile_context>
chip_gen: v7x
topology: tpu7x:2x2x1
jax: 0.10.0
libtpu: 0.0.40
codegen_flags: <defaults>
</compile_context>

<pallas_src>
import math

import jax
import jax.numpy as jnp
from jax.experimental import pallas as pl
from jax.experimental.pallas import tpu as pltpu


def z_embedding_kernel(emb_ref, w1_ref, b1_ref, w2_ref, b2_ref, out_ref):
    # lin1 on the MXU; operands stay in their native dtype, accumulation in f32.
    h = jnp.dot(emb_ref[...], w1_ref[...], preferred_element_type=jnp.float32)
    h = h + b1_ref[...].astype(jnp.float32)
    # Swish (x * sigmoid(x)) in f32: mul on VPU, sigmoid on EUP (separate bundle slot).
    h = h * jax.nn.sigmoid(h)
    # lin2 on the MXU: feed operands in the weight dtype (bf16 stays bf16), f32 accumulate.
    out = jnp.dot(h.astype(w2_ref.dtype), w2_ref[...], preferred_element_type=jnp.float32)
    out = out + b2_ref[...].astype(jnp.float32)
    out_ref[...] = out.astype(out_ref.dtype)


def _round_up(x, m):
    return ((x + m - 1) // m) * m


def z_embedding(emb, w1, b1, w2, b2, *, tb=256):
    """emb: (B, Z); w1: (Z, C); b1: (1, C); w2: (C, C); b2: (1, C) -> (B, C)."""
    B, Z = emb.shape
    C = w1.shape[1]
    assert w1.shape == (Z, C) and w2.shape == (C, C)
    assert b1.shape == (1, C) and b2.shape == (1, C)

    # Batch-tile granularity: bf16 packs 2 rows per sublane -> keep TB a multiple of 16.
    sublane = 16 if emb.dtype == jnp.bfloat16 else 8
    if B <= tb:
        TB, B_pad = B, B                                   # single tile == full array dim (legal)
    else:
        TB = max(sublane, (tb // sublane) * sublane)
        B_pad = _round_up(B, TB)                           # pad so the grid divides evenly

    emb_p = emb if B_pad == B else jnp.pad(emb, ((0, B_pad - B), (0, 0)))

    isz = lambda a: a.dtype.itemsize
    weight_bytes = (w1.size * isz(w1) + w2.size * isz(w2)
                    + b1.size * isz(b1) + b2.size * isz(b2))
    act_bytes = (2 * TB * Z * isz(emb_p)      # double-buffered emb tiles
                 + 2 * TB * C * isz(emb_p)    # double-buffered out tiles
                 + 4 * TB * C * 4)            # f32 intermediates headroom
    vmem_limit = int(min(max(2 * (weight_bytes + act_bytes), 32 << 20), 64 << 20))

    cost = pl.CostEstimate(
        flops=int(2 * B_pad * (Z * C + C * C)),
        transcendentals=int(B_pad * C),                    # sigmoid
        bytes_accessed=int(emb_p.size * isz(emb_p) + weight_bytes
                           + B_pad * C * isz(emb_p)),
    )

    call = pl.pallas_call(
        z_embedding_kernel,
        out_shape=jax.ShapeDtypeStruct((B_pad, C), emb.dtype),
        grid_spec=pltpu.PrefetchScalarGridSpec(
            num_scalar_prefetch=0,
            grid=(B_pad // TB,),
            in_specs=[
                pl.BlockSpec((TB, Z), lambda i: (i, 0)),   # streamed activation tiles
                pl.BlockSpec((Z, C), lambda i: (0, 0)),    # W1: grid-invariant -> VMEM-resident
                pl.BlockSpec((1, C), lambda i: (0, 0)),    # b1
                pl.BlockSpec((C, C), lambda i: (0, 0)),    # W2: grid-invariant -> VMEM-resident
                pl.BlockSpec((1, C), lambda i: (0, 0)),    # b2
            ],
            out_specs=pl.BlockSpec((TB, C), lambda i: (i, 0)),
        ),
        compiler_params=pltpu.CompilerParams(
            dimension_semantics=("parallel",),   # v7x: both TensorCores split the batch tiles
            vmem_limit_bytes=vmem_limit,
        ),
        cost_estimate=cost,
    )
    out = call(emb_p, w1, b1, w2, b2)
    return out[:B] if B_pad != B else out


def init_params(key, z_dim, n_channels, dtype=jnp.float32):
    """Deterministic PyTorch-Linear-style init (uniform in +/- 1/sqrt(fan_in))."""
    k1, k2, k3, k4 = jax.random.split(key, 4)
    bound1 = 1.0 / math.sqrt(z_dim)
    bound2 = 1.0 / math.sqrt(n_channels)
    # stored as (in_features, out_features) == torch weight.T
    w1 = jax.random.uniform(k1, (z_dim, n_channels), dtype, -bound1, bound1)
    b1 = jax.random.uniform(k2, (1, n_channels), dtype, -bound1, bound1)
    w2 = jax.random.uniform(k3, (n_channels, n_channels), dtype, -bound2, bound2)
    b2 = jax.random.uniform(k4, (1, n_channels), dtype, -bound2, bound2)
    return w1, b1, w2, b2


def reference(emb, w1, b1, w2, b2):
    f32 = lambda a: a.astype(jnp.float32)
    h = f32(emb) @ f32(w1) + f32(b1)
    h = h * jax.nn.sigmoid(h)
    return h @ f32(w2) + f32(b2)


if __name__ == "__main__":
    key = jax.random.PRNGKey(0)
    k_emb, k_params = jax.random.split(key)

    # Small shapes consistent with ZEmbedding(z_dim, n_channels).
    batch, z_dim, n_channels = 48, 64, 128

    emb = jax.random.normal(k_emb, (batch, z_dim), jnp.float32)
    w1, b1, w2, b2 = init_params(k_params, z_dim, n_channels)

    ref = reference(emb, w1, b1, w2, b2)

    # Tiled path: tb=16 -> grid=(3,), exercises pipelining + resident weights.
    out = jax.block_until_ready(z_embedding(emb, w1, b1, w2, b2, tb=16))
    assert out.shape == (batch, n_channels)
    assert jnp.allclose(out, ref, atol=1e-5, rtol=1e-5)

    # Single-tile path (whole batch in one block).
    out_single = jax.block_until_ready(z_embedding(emb, w1, b1, w2, b2))
    assert jnp.allclose(out_single, ref, atol=1e-5, rtol=1e-5)

    # bf16 path: operands feed the MXU natively, accumulation stays in f32.
    emb16, w116, b116, w216, b216 = jax.tree.map(
        lambda a: a.astype(jnp.bfloat16), (emb, w1, b1, w2, b2))
    out16 = jax.block_until_ready(z_embedding(emb16, w116, b116, w216, b216, tb=16))
    assert out16.dtype == jnp.bfloat16
    assert jnp.allclose(out16.astype(jnp.float32), ref, atol=1e-1, rtol=1e-1)

    print("KERNEL_OK")
</pallas_src>

<mosaic_0001>
module attributes {stable_mosaic.version = 11 : i64} {
  func.func @z_embedding_kernel(%arg0: i32, %arg1: memref<16x64xf32, #tpu.memory_space<vmem>>, %arg2: memref<64x128xf32, #tpu.memory_space<vmem>>, %arg3: memref<1x128xf32, #tpu.memory_space<vmem>>, %arg4: memref<128x128xf32, #tpu.memory_space<vmem>>, %arg5: memref<1x128xf32, #tpu.memory_space<vmem>>, %arg6: memref<16x128xf32, #tpu.memory_space<vmem>>) attributes {dimension_semantics = [#tpu.dimension_semantics<parallel>], iteration_bounds = array<i64: 3>, scalar_prefetch = 0 : i64, scratch_operands = 0 : i64, tpu.core_type = #tpu.core_type<tc>, window_params = [{transform_indices = @transform_0, window_bounds = array<i64: 16, 64>}, {pipeline_mode = #tpu.pipeline_mode<synchronous>, transform_indices = @transform_1, window_bounds = array<i64: 64, 128>}, {pipeline_mode = #tpu.pipeline_mode<synchronous>, transform_indices = @transform_2, window_bounds = array<i64: 1, 128>}, {pipeline_mode = #tpu.pipeline_mode<synchronous>, transform_indices = @transform_3, window_bounds = array<i64: 128, 128>}, {pipeline_mode = #tpu.pipeline_mode<synchronous>, transform_indices = @transform_4, window_bounds = array<i64: 1, 128>}, {transform_indices = @transform_5, window_bounds = array<i64: 16, 128>}]} {
    %c0 = arith.constant 0 : index
    %c0_0 = arith.constant 0 : index
    %0 = vector.load %arg1[%c0, %c0_0] : memref<16x64xf32, #tpu.memory_space<vmem>>, vector<16x64xf32>
    %c0_1 = arith.constant 0 : index
    %c0_2 = arith.constant 0 : index
    %1 = vector.load %arg2[%c0_1, %c0_2] : memref<64x128xf32, #tpu.memory_space<vmem>>, vector<64x128xf32>
    %cst = arith.constant dense<0.000000e+00> : vector<16x128xf32>
    %2 = tpu.matmul %0, %1, %cst {dimension_numbers = #tpu.dot_dimension_numbers<[1], [0], [0], [1], [0, 0, 1, 1], [], []>} : vector<16x64xf32>, vector<64x128xf32>, vector<16x128xf32> -> vector<16x128xf32>
    %c0_3 = arith.constant 0 : index
    %c0_4 = arith.constant 0 : index
    %3 = vector.load %arg3[%c0_3, %c0_4] : memref<1x128xf32, #tpu.memory_space<vmem>>, vector<1x128xf32>
    %4 = vector.broadcast %3 : vector<1x128xf32> to vector<16x128xf32>
    %5 = arith.addf %2, %4 : vector<16x128xf32>
    %6 = arith.negf %5 : vector<16x128xf32>
    %7 = math.exp %6 : vector<16x128xf32>
    %cst_5 = arith.constant 1.000000e+00 : f32
    %8 = vector.broadcast %cst_5 : f32 to vector<16x128xf32>
    %9 = arith.addf %8, %7 : vector<16x128xf32>
    %10 = arith.divf %8, %9 : vector<16x128xf32>
    %11 = arith.mulf %5, %10 : vector<16x128xf32>
    %c0_6 = arith.constant 0 : index
    %c0_7 = arith.constant 0 : index
    %12 = vector.load %arg4[%c0_6, %c0_7] : memref<128x128xf32, #tpu.memory_space<vmem>>, vector<128x128xf32>
    %cst_8 = arith.constant dense<0.000000e+00> : vector<16x128xf32>
    %13 = tpu.matmul %11, %12, %cst_8 {dimension_numbers = #tpu.dot_dimension_numbers<[1], [0], [0], [1], [0, 0, 1, 1], [], []>} : vector<16x128xf32>, vector<128x128xf32>, vector<16x128xf32> -> vector<16x128xf32>
    %c0_9 = arith.constant 0 : index
    %c0_10 = arith.constant 0 : index
    %14 = vector.load %arg5[%c0_9, %c0_10] : memref<1x128xf32, #tpu.memory_space<vmem>>, vector<1x128xf32>
    %15 = vector.broadcast %14 : vector<1x128xf32> to vector<16x128xf32>
    %16 = arith.addf %13, %15 : vector<16x128xf32>
    %c0_11 = arith.constant 0 : index
    %c0_12 = arith.constant 0 : index
    %17 = vector.load %arg6[%c0_11, %c0_12] : memref<16x128xf32, #tpu.memory_space<vmem>>, vector<16x128xf32>
    tpu.vector_store %arg6[%c0_11, %c0_12], %16 {strides = array<i32>} : memref<16x128xf32, #tpu.memory_space<vmem>>, vector<16x128xf32>,
    return
  }
  func.func @transform_0(%arg0: i32) -> (i32, i32) {
    %c0_i32 = arith.constant 0 : i32
    %c0_i32_0 = arith.constant 0 : i32
    return %arg0, %c0_i32 : i32, i32
  }
  func.func @transform_1(%arg0: i32) -> (i32, i32) {
    %c0_i32 = arith.constant 0 : i32
    %c0_i32_0 = arith.constant 0 : i32
    %c0_i32_1 = arith.constant 0 : i32
    return %c0_i32, %c0_i32_0 : i32, i32
  }
  func.func @transform_2(%arg0: i32) -> (i32, i32) {
    %c0_i32 = arith.constant 0 : i32
    %c0_i32_0 = arith.constant 0 : i32
    %c0_i32_1 = arith.constant 0 : i32
    return %c0_i32, %c0_i32_0 : i32, i32
  }
  func.func @transform_3(%arg0: i32) -> (i32, i32) {
    %c0_i32 = arith.constant 0 : i32
    %c0_i32_0 = arith.constant 0 : i32
    %c0_i32_1 = arith.constant 0 : i32
    return %c0_i32, %c0_i32_0 : i32, i32
  }
  func.func @transform_4(%arg0: i32) -> (i32, i32) {
    %c0_i32 = arith.constant 0 : i32
    %c0_i32_0 = arith.constant 0 : i32
    %c0_i32_1 = arith.constant 0 : i32
    return %c0_i32, %c0_i32_0 : i32, i32
  }
  func.func @transform_5(%arg0: i32) -> (i32, i32) {
    %c0_i32 = arith.constant 0 : i32
    %c0_i32_0 = arith.constant 0 : i32
    return %arg0, %c0_i32 : i32, i32
  }
}

</mosaic_0001>

<bundles_post_ra>
// kernel: tpu_custom_call.1
= control target key start
LH: loop header
LB: loop body
LE: loop exit
PB: predicated region body
PF: predicated region fallthrough
CT: control target
= control target key end

     0   :  { %10 = vsyncpa [#allocation3], 0  ;;  %s1270_s0 = inlined_call_operand.hbm [shape: f32[48,64], index: 0, kind: input, shape index: {}]   ;;  %s1271_s1 = inlined_call_operand.hbm [shape: f32[64,128], index: 1, kind: input, shape index: {}]   ;;  %s1272_s2 = inlined_call_operand.vmem [shape: f32[1,128], index: 2, kind: input, shape index: {}]   ;;  %s1273_s3 = inlined_call_operand.hbm [shape: f32[128,128], index: 3, kind: input, shape index: {}]   ;;  %s1274_s4 = inlined_call_operand.vmem [shape: f32[1,128], index: 4, kind: input, shape index: {}]   ;;  %s1275_s5 = inlined_call_operand.hbm [shape: f32[48,128], index: 5, kind: output, shape index: {}]  }
   0x1   :  { %12 = vsyncpa [#allocation3 + $0x1], 0 }
   0x2   :  { %13 = vsyncpa [#allocation6], 0 }
   0x3   :  { %14 = vsyncpa [#allocation4], 0 }
   0x4   :  { %16 = vsyncpa [#allocation4 + $0x1], 0  ;;  %s1024_s18 = smov 0   ;;  %s1026_s19 = smov 0  }
   0x5   :  { %s1028_s20 = smov 0   ;;  %s1030_s21 = smov 0  }
   0x6 LB: > { %s1045_s22 = sadd.s32 4294967295, %s984_s21   ;;  %s593_s23 = sadd.s32 4294967294, %s984_s21   ;;  %s984_s21 = sphi %s1030_s21, %s1294_s21   ;;  %s980_s20 = sphi %s1028_s20, %s1293_s20   ;;  %s976_s19 = sphi %s1026_s19, %s1292_s19   ;;  %s972_s18 = sphi %s1024_s18, %s1291_s18  }
   0x7   : > { %p42_p0 = scmp.ne.s32.totalorder %s976_s19, %s972_s18  ;;  %p1276_p1 = scmp.eq.s32.totalorder %s1045_s22, 0 }
   0x8   : > { %p156_p3 = scmp.eq.s32.totalorder %s593_s23, 2  ;;  %p594_p5 = scmp.ge.s32.totalorder %s984_s21, 1 }
   0x9   : > { %p1054_p4 = por %p1276_p1, %p42_p0  ;;  %p163_p7 = scmp.lt.s32.totalorder %s984_s21, 4 }
   0xa   : > { %p1059_p6 = por %p156_p3, %p42_p0  ;;  %s986_s27 = smov [#allocation5]  }
   0xb   : > { %s1279_s24 = scalar_select %p1054_p4, 1, 0 }
   0xc   : > { %s1280_s25 = scalar_select %p1059_p6, 1, 0 }
   0xd   : > { %p1064_p8 = pnand %p594_p5, %p163_p7  ;;  %s175_s28 = sshll.u32 %s986_s27, 4  ;;  %s176_s28 = int_to_ptr.vmem [resolvable:$true] %s175_s28 }
   0xe   : > { %s987_s30 = smov [#allocation7]   ;;  %s828_s9 = scalar_lea.hbm %s1271_s1, 1024 }
   0xf   : > { %s1281_s26 = scalar_select %p1064_p8, 1, 0 }
  0x10   : > { %p761_p9 = pneg %p1064_p8  ;;  %s191_s6 = sshll.u32 %s987_s30, 4  ;;  %s1076_s6 = int_to_ptr.vmem [resolvable:$true] %s191_s6 }
  0x11   : > { %p829_p11 = scmp.ne.s32.totalorder %s1271_s1, %s828_s9  ;;  %p835_p3 = scmp.lt.u32.totalorder %s828_s9, %s1271_s1 }
  0x12   : > { %p1072_p10 = pnand %p761_p9, %p1276_p1 }
  0x14   : > { %p830_p12 = pneg %p1072_p10 }
  0x16   : > { %p831_p13 = pnand %p830_p12, %p829_p11 }
  0x18   : > { %p832_p0 = pneg %p831_p13 }
  0x1a   : > { %p837_p5 = pnand %p835_p3, %p832_p0 }
  0x1c   : > { %840 = shalt.err (!%p837_p5)
}
  0x1d   : > { %s841_s14 = scalar_lea.vmem %s176_s28, 1024  ;;  %p849_p2 = scmp.lt.s32.totalorder %s176_s28, %s176_s28 }
  0x1e   : > { %p842_p7 = scmp.ne.s32.totalorder %s176_s28, %s841_s14  ;;  %p850_p6 = scmp.lt.s32.totalorder %s841_s14, %s841_s14 }
  0x20   : > { %p844_p9 = pnand %p842_p7, %p830_p12  ;;  %p851_p4 = por %p850_p6, %p849_p2 }
  0x22   : > { %p845_p1 = pneg %p844_p9 }
  0x24   : > { %p852_p8 = pnand %p851_p4, %p845_p1 }
  0x26   : > { %855 = shalt.err (!%p852_p8)
}
  0x27   : > { %s988_s15 = smov 128   ;;  %s989_s16 = smov 8  }
  0x28   : > { %764 = dma.hbm_to_vmem [thread:$0]  (!%p1072_p10), %s1271_s1, 1024, %s176_s28, [#allocation6], %s988_s15, %s988_s15, %s989_s16  }
  0x29   : > { %s856_s7 = scalar_lea.hbm %s1273_s3, 2048 }
  0x2a   : > { %p857_p1 = scmp.ne.s32.totalorder %s1273_s3, %s856_s7  ;;  %p863_p6 = scmp.lt.u32.totalorder %s856_s7, %s1273_s3 }
  0x2c   : > { %p859_p2 = pnand %p857_p1, %p830_p12 }
  0x2e   : > { %p860_p4 = pneg %p859_p2 }
  0x30   : > { %p865_p8 = pnand %p863_p6, %p860_p4 }
  0x32   : > { %868 = shalt.err (!%p865_p8)
}
  0x33   : > { %s869_s28 = scalar_lea.vmem %s1076_s6, 2048  ;;  %p877_p3 = scmp.lt.s32.totalorder %s1076_s6, %s1076_s6 }
  0x34   : > { %p870_p11 = scmp.ne.s32.totalorder %s1076_s6, %s869_s28  ;;  %p878_p5 = scmp.lt.s32.totalorder %s869_s28, %s869_s28 }
  0x36   : > { %p872_p13 = pnand %p870_p11, %p830_p12  ;;  %p879_p7 = por %p878_p5, %p877_p3 }
  0x38   : > { %p873_p0 = pneg %p872_p13 }
  0x3a   : > { %p880_p9 = pnand %p879_p7, %p873_p0 }
  0x3c   : > { %883 = shalt.err (!%p880_p9)
}
  0x3d   : > { %767 = dma.hbm_to_vmem [thread:$0]  (!%p1072_p10), %s1273_s3, 2048, %s1076_s6, [#allocation6], %s988_s15, %s988_s15, %s989_s16  }
  0x3e   : > { %s1132_s29 = sadd.s32 1, %s984_s21   ;;  %s29_s14 = sadd.s32 1, %s980_s20 }
  0x3f   : > { %s26_s17 = ssub.s32 %s984_s21, %s1132_s29  ;;  %p36_p12 = scmp.ne.s32.totalorder %s980_s20, %s976_s19 }
  0x40   : > { %p27_p1 = scmp.eq.s32.totalorder %s26_s17, 0  ;;  %p37_p2 = scmp.eq.s32.totalorder %s984_s21, 0 }
  0x41   : > { %p1283_p4 = scmp.eq.s32.totalorder %s1045_s22, 2  ;;  %p778_p8 = scmp.lt.s32.totalorder %s984_s21, 3 }
  0x42   : > { %s1148_s27 = scalar_select %p27_p1, %s980_s20, %s29_s14  }
  0x43   : > { %p1142_p6 = por %p1283_p4, %p36_p12  ;;  %p38_p11 = por %p37_p2, %p36_p12 }
  0x44   : > { %s208_s30 = sand.u32 1, %s980_s20   ;;  %s617_s6 = sshll.u32 %s984_s21, 8 }
  0x45   : > { %s598_s7 = sshll.u32 %s208_s30, 4  ;;  %s1155_s10 = scalar_lea.hbm %s1270_s0, %s617_s6 }
  0x46   : > { %s212_s11 = scalar_lea.vmem [#allocation2], %s598_s7  ;;  %p1159_p10 = pnand %p778_p8, %p38_p11 }
  0x47   : > { %s219_s28 = sshll.u32 %s212_s11, 4  ;;  %s1163_s13 = scalar_lea.sflag [#allocation3], %s208_s30  ;;  %s1157_s28 = int_to_ptr.vmem [resolvable:$true] %s219_s28 }
  0x48   : > { %s884_s14 = scalar_lea.hbm %s1155_s10, 256  ;;  %p886_p0 = pneg %p1159_p10 }
  0x49   : > { %p885_p13 = scmp.ne.s32.totalorder %s1155_s10, %s884_s14  ;;  %s889_s6 = scalar_lea.hbm %s1270_s0, 768 }
  0x4a   : > { %p890_p7 = scmp.lt.u32.totalorder %s1155_s10, %s1270_s0  ;;  %p891_p9 = scmp.lt.u32.totalorder %s889_s6, %s884_s14 }
  0x4b   : > { %p887_p3 = pnand %p886_p0, %p885_p13  ;;  %p893_p1 = scmp.lt.u32.totalorder %s884_s14, %s1155_s10 }
  0x4c   : > { %p892_p12 = por %p891_p9, %p890_p7 }
  0x4d   : > { %p888_p5 = pneg %p887_p3 }
  0x4e   : > { %p894_p2 = por %p893_p1, %p892_p12 }
  0x50   : > { %p895_p4 = pnand %p894_p2, %p888_p5 }
  0x52   : > { %898 = shalt.err (!%p895_p4)
}
  0x53   : > { %s899_s30 = scalar_lea.vmem %s1157_s28, 256  ;;  %s990_s11 = smov [#allocation2]  }
  0x54   : > { %p900_p8 = scmp.ne.s32.totalorder %s1157_s28, %s899_s30  ;;  %s904_s17 = sshll.u32 %s990_s11, 4  ;;  %s905_s17 = int_to_ptr.vmem [resolvable:$false] %s904_s17 }
  0x55   : > { %s906_s7 = scalar_lea.vmem %s905_s17, 512  ;;  %p907_p3 = scmp.lt.s32.totalorder %s1157_s28, %s905_s17 }
  0x56   : > { %p902_p11 = pnand %p900_p8, %p886_p0  ;;  %p908_p7 = scmp.lt.s32.totalorder %s906_s7, %s899_s30 }
  0x58   : > { %p903_p13 = pneg %p902_p11  ;;  %p909_p9 = por %p908_p7, %p907_p3 }
  0x5a   : > { %p910_p12 = pnand %p909_p9, %p903_p13 }
  0x5c   : > { %913 = shalt.err (!%p910_p12)
}
  0x5d   : > { %771 = dma.hbm_to_vmem [thread:$0]  (!%p1159_p10), %s1155_s10, 256, %s1157_s28, %s1163_s13, %s988_s15, %s988_s15, %s989_s16  }
  0x5e   : > { %p1286_p0 = scmp.ne.s32.totalorder %s1281_s26, 0 }
  0x5f   : > { %s1197_s14 = sand.u32 (!%p1286_p0), 1, %s976_s19   ;;  %p1287_p5 = scmp.ne.s32.totalorder (!%p1286_p0), %s1279_s24, 0 }
  0x60   : > { %231 = sbr.rel (%p1286_p0) target bundleno = 600 (0x258), region = 40  ;;  %s602_s6 = sshll.u32 (!%p1286_p0), %s1197_s14, 4 }
  0x61   : > { %s234_s8 = scalar_lea.sflag (!%p1286_p0), [#allocation3], %s1197_s14  ;;  %s237_s12 = scalar_lea.vmem (!%p1286_p0), [#allocation2], %s602_s6 }
  0x67   : > { %959 = dma.done.wait (%p1287_p5), %s234_s8, 256  }
  0x68   : > { %961 = vsyncadd (%p1287_p5), %s234_s8, 4294967040  ;;  %p1288_p10 = scmp.eq.s32.totalorder %s1045_s22, 0 }
  0x6a   : > { %963 = dma.done.wait (%p1288_p10), [#allocation6], 3072   ;;  %p1289_p1 = pmov %p1288_p10 }
  0x6b   : > { %v276_v0 = vld [vmem:[#allocation5] sm:$0xff]  ;;  %v277_v1 = vld [vmem:[#allocation5 + $0x8] sm:$0xff]  ;;  %v278_v2 = vld [vmem:[#allocation5 + $0x10] sm:$0xff]  ;;  %vm291_vm0 = vcmask 523264   ;;  %s271_s15 = scalar_lea.vmem [#allocation8], %s602_s6  ;;  %s618_s13 = sshll.u32 %s1045_s22, 8 }
  0x6c   : > { %965 = vsyncadd (%p1289_p1), [#allocation6], 4294964224  ;;  %v701_v3 = vpack.c.bf16 %v277_v1, %v276_v0  ;;  %v279_v4 = vld [vmem:[#allocation5 + $0x18] sm:$0xff]  ;;  %v280_v6 = vld [vmem:[#allocation5 + $0x20] sm:$0xff]  ;;  %s501_s16 = sshll.u32 %s271_s15, 4  ;;  %s1227_s11 = scalar_lea.hbm %s1275_s5, %s618_s13  ;;  %s1222_s16 = int_to_ptr.vmem [resolvable:$true] %s501_s16 }
  0x6d   : > { %v705_v5 = vpack.c.bf16 %v279_v4, %v278_v2  ;;  %v281_v7 = vld [vmem:[#allocation5 + $0x28] sm:$0xff]  ;;  %v274_v8 = vld [vmem:[%s237_s12] sm:$0xff]  ;;  %v283_v11 = vld [vmem:[#allocation5 + $0x38] sm:$0xff]  ;;  %s488_s17 = scalar_lea.sflag [#allocation4], %s1197_s14  ;;  %s914_s7 = scalar_lea.vmem %s1222_s16, 256 }
  0x6e   : > { %702 = vmatprep.subr.bf16.mxu0 %v701_v3  ;;  %663 = vmatprep.mubr.msk.f32.mxu0 %vm291_vm0, %v274_v8  ;;  %v709_v9 = vpack.c.bf16 %v281_v7, %v280_v6  ;;  %v282_v10 = vld [vmem:[#allocation5 + $0x30] sm:$0xff]  ;;  %v275_v13 = vld [vmem:[%s237_s12 + $0x8] sm:$0xff]  ;;  %v387_v14 = vld [vmem:[#allocation7] sm:$0xff]  ;;  %p915_p2 = scmp.ne.s32.totalorder %s1222_s16, %s914_s7  ;;  %s991_s22 = smov [#allocation8]  }
  0x6f   : > { %704 = vmatpush3.bf16.msra.mxu0 %v701_v3  ;;  %v713_v12 = vpack.c.bf16 %v283_v11, %v282_v10  ;;  %v388_v15 = vld [vmem:[#allocation7 + $0x8] sm:$0xff]  ;;  %v389_v17 = vld [vmem:[#allocation7 + $0x10] sm:$0xff]  ;;  %v390_v18 = vld [vmem:[#allocation7 + $0x18] sm:$0xff]  ;;  %s918_s6 = sshll.u32 %s991_s22, 4  ;;  %s919_s6 = int_to_ptr.vmem [resolvable:$false] %s918_s6 }
  0x70   : > { %706 = vmatprep.subr.bf16.mxu0 %v705_v5  ;;  %v717_v16 = vpack.c.bf16 %v388_v15, %v387_v14  ;;  %v721_v19 = vpack.c.bf16 %v390_v18, %v389_v17  ;;  %v391_v20 = vld [vmem:[#allocation7 + $0x20] sm:$0xff]  ;;  %v392_v21 = vld [vmem:[#allocation7 + $0x28] sm:$0xff]  ;;  %v393_v23 = vld [vmem:[#allocation7 + $0x30] sm:$0xff]  ;;  %p916_p4 = pnand %p915_p2, %p1142_p6  ;;  %s920_s8 = scalar_lea.vmem %s919_s6, 512 }
  0x71   : > { %v725_v22 = vpack.c.bf16 %v392_v21, %v391_v20  ;;  %v394_v24 = vld [vmem:[#allocation7 + $0x38] sm:$0xff]  ;;  %v395_v26 = vld [vmem:[#allocation7 + $0x40] sm:$0xff]  ;;  %v396_v27 = vld [vmem:[#allocation7 + $0x48] sm:$0xff]  ;;  %p921_p11 = scmp.lt.s32.totalorder %s1222_s16, %s919_s6  ;;  %p922_p13 = scmp.lt.s32.totalorder %s920_s8, %s914_s7 }
  0x72   : > { %718 = vmatprep.subr.bf16.mxu1 %v717_v16  ;;  %v729_v25 = vpack.c.bf16 %v394_v24, %v393_v23  ;;  %v733_v28 = vpack.c.bf16 %v396_v27, %v395_v26  ;;  %v397_v29 = vld [vmem:[#allocation7 + $0x50] sm:$0xff]  ;;  %v398_v30 = vld [vmem:[#allocation7 + $0x58] sm:$0xff]  ;;  %v399_v32 = vld [vmem:[#allocation7 + $0x60] sm:$0xff]  ;;  %p917_p8 = pneg %p916_p4 }
  0x73   : > { %708 = vmatpush3.bf16.msra.mxu0 %v705_v5  ;;  %720 = vmatpush3.bf16.msra.mxu1 %v717_v16  ;;  %v737_v31 = vpack.c.bf16 %v398_v30, %v397_v29  ;;  %v400_v33 = vld [vmem:[#allocation7 + $0x68] sm:$0xff]  ;;  %v401_v35 = vld [vmem:[#allocation7 + $0x70] sm:$0xff]  ;;  %v402_v36 = vld [vmem:[#allocation7 + $0x78] sm:$0xff]  ;;  %p923_p3 = por %p922_p13, %p921_p11 }
  0x74   : > { %710 = vmatprep.subr.bf16.mxu0 %v709_v9  ;;  %722 = vmatprep.subr.bf16.mxu1 %v721_v19  ;;  %v741_v34 = vpack.c.bf16 %v400_v33, %v399_v32  ;;  %v745_v37 = vpack.c.bf16 %v402_v36, %v401_v35  ;;  %v606_v38 = vld [vmem:[%s1272_s2] ss:$0 sm:$0xff] }
  0x75   : > { %v611_v53 = vld [vmem:[%s1274_s4] ss:$0 sm:$0xff]  ;;  %p924_p7 = pnand %p923_p3, %p917_p8 }
  0x77   : > { %712 = vmatpush3.bf16.msra.mxu0 %v709_v9  ;;  %724 = vmatpush3.bf16.msra.mxu1 %v721_v19 }
  0x78   : > { %714 = vmatprep.subr.bf16.mxu0 %v713_v12  ;;  %726 = vmatprep.subr.bf16.mxu1 %v725_v22 }
  0x7b   : > { %716 = vmatpush3.bf16.msra.mxu0 %v713_v12  ;;  %728 = vmatpush3.bf16.msra.mxu1 %v725_v22 }
  0x7c   : > { %730 = vmatprep.subr.bf16.mxu1 %v729_v25 }
  0x7e   : > { %664 = vmatmul.mubr.msk.f32.vlgmr.msra.gmra.mrb[0].mxu0 %vm291_vm0, %v275_v13 }
  0x7f   : > { %732 = vmatpush3.bf16.msra.mxu1 %v729_v25 }
  0x80   : > { %734 = vmatprep.subr.bf16.mxu1 %v733_v28 }
  0x83   : > { %736 = vmatpush3.bf16.msra.mxu1 %v733_v28 }
  0x84   : > { %738 = vmatprep.subr.bf16.mxu1 %v737_v31 }
  0x87   : > { %740 = vmatpush3.bf16.msra.mxu1 %v737_v31 }
  0x88   : > { %742 = vmatprep.subr.bf16.mxu1 %v741_v34 }
  0x8b   : > { %744 = vmatpush3.bf16.msra.mxu1 %v741_v34 }
  0x8c   : > { %746 = vmatprep.subr.bf16.mxu1 %v745_v37 }
  0x8f   : > { %748 = vmatpush3.bf16.msra.mxu1 %v745_v37 }
 0x151   : > { %v665_v39 = vpop.f32.mrb[0].mxu0 }
 0x152   : > { %v370_v40 = vadd.f32 %v665_v39, %v606_v38  ;;  %v364_v41 = vpop.f32.mrb[1].mxu0 }
 0x153   : > { %v365_v42 = vadd.f32 %v606_v38, %v364_v41 }
 0x154   : > { %v610_v43 = vmul.f32 -1.442695, %v370_v40 }
 0x155   : > { %v609_v44 = vmul.f32 -1.442695, %v365_v42 }
 0x156   : > { %820 = vpow2.f32 %v610_v43 }
 0x157   : > { %822 = vpow2.f32 %v609_v44 }
 0x160   : > { %v821_v45 = vpop.eup %820 }
 0x161   : > { %v823_v46 = vpop.eup %822  ;;  %v380_v47 = vadd.f32 1.0, %v821_v45 }
 0x162   : > { %v379_v48 = vadd.f32 1.0, %v823_v46 }
 0x163   : > { %824 = vrcp.f32 %v380_v47 }
 0x164   : > { %826 = vrcp.f32 %v379_v48 }
 0x16d   : > { %v825_v49 = vpop.eup %824 }
 0x16e   : > { %v827_v50 = vpop.eup %826  ;;  %v386_v52 = vmul.f32 %v825_v49, %v370_v40 }
 0x16f   : > { %v385_v51 = vmul.f32 %v827_v50, %v365_v42 }
 0x171   : > { %698 = vmatprep.mubr.f32.mxu1 %v385_v51 }
 0x172   : > { %699 = vmatmul.mubr.f32.vlgmr.msra.gmra.mrb[0].mxu1 %v386_v52 }
 0x245   : > { %v700_v54 = vpop.f32.mrb[0].mxu1 }
 0x246   : > { %v482_v55 = vadd.f32 %v700_v54, %v611_v53  ;;  %v476_v56 = vpop.f32.mrb[1].mxu1 }
 0x247   : > { %v477_v57 = vadd.f32 %v611_v53, %v476_v56 }
 0x248   : > { %486 = vst [vmem:[%s271_s15 + $0x8] sm:$0xff] %v482_v55 }
 0x249   : > { %485 = vst [vmem:[%s271_s15] sm:$0xff] %v477_v57 }
 0x24a   : > { %927 = shalt.err (!%p924_p7)
}
 0x24b   : > { %s928_s12 = scalar_lea.hbm %s1227_s11, 256  ;;  %s932_s15 = scalar_lea.hbm %s1275_s5, 768 }
 0x24c   : > { %p929_p9 = scmp.ne.s32.totalorder %s1227_s11, %s928_s12  ;;  %p933_p5 = scmp.lt.u32.totalorder %s1227_s11, %s1275_s5 }
 0x24d   : > { %p934_p10 = scmp.lt.u32.totalorder %s932_s15, %s928_s12  ;;  %p936_p2 = scmp.lt.u32.totalorder %s928_s12, %s1227_s11 }
 0x24e   : > { %p930_p12 = pnand %p929_p9, %p1142_p6 }
 0x24f   : > { %p935_p1 = por %p934_p10, %p933_p5 }
 0x250   : > { %p931_p0 = pneg %p930_p12 }
 0x251   : > { %p937_p4 = por %p936_p2, %p935_p1 }
 0x253   : > { %p938_p8 = pnand %p937_p4, %p931_p0 }
 0x255   : > { %941 = shalt.err (!%p938_p8)
}
 0x256   : > { %s992_s13 = smov 128   ;;  %s993_s9 = smov 8  }
 0x257   : > { %759 = dma.vmem_to_hbm [thread:$0]  (%p1142_p6), %s1222_s16, 256, %s1227_s11, %s488_s17, %s992_s13, %s992_s13, %s993_s9  }
 0x258 PF: > { %p781_p11 = scmp.ge.s32.totalorder %s984_s21, 2  ;;  %s516_s30 = sand.u32 1, %s972_s18  }
 0x259   : > { %p1290_p13 = scmp.ne.s32.totalorder %s1280_s25, 0  ;;  %s517_s7 = scalar_lea.sflag [#allocation4], %s516_s30 }
 0x25b   : > { %p773_p3 = pnand %p781_p11, %p1290_p13 }
 0x25d   : > { %967 = dma.done.wait (!%p773_p3), %s517_s7, 256  }
 0x25e   : > { %969 = vsyncadd (!%p773_p3), %s517_s7, 4294967040  ;;  %p19_p7 = scmp.ge.s32.totalorder %s1132_s29, 5   ;;  %s1291_s18 = smov %s976_s19 }
 0x25f   : > { %s1292_s19 = smov %s980_s20  ;;  %s1293_s20 = smov %s1148_s27 }
 0x260   : > { %s1294_s21 = smov %s1132_s29  ;;  %21 = sbr.rel (!%p19_p7) target bundleno = 6 (0x6), region = 93 }
 0x267   :  { %522 = vsyncpa [#allocation3], 1 }
 0x268   :  { %524 = vsyncpa [#allocation3 + $0x1], 1 }
 0x269   :  { %525 = vsyncpa [#allocation6], 1 }
 0x26a   :  { %526 = vsyncpa [#allocation4], 1 }
 0x26b   :  { %528 = vsyncpa [#allocation4 + $0x1], 1 }

</bundles_post_ra>
